<compile_context>
chip_gen: v7x
topology: tpu7x:2x2x1
jax: 0.10.0
libtpu: 0.0.40
codegen_flags: <defaults>
</compile_context>

<pallas_src>
import functools

import jax
import jax.numpy as jnp
from jax.experimental import pallas as pl
from jax.experimental.pallas import tpu as pltpu


def _round_up(a, m):
    return -(-a // m) * m


def mlp_softmax_kernel(x_ref, w1_ref, b1_ref, w2_ref, b2_ref, w3_ref, b3_ref,
                       o_ref):
    """One batch tile in batch-in-lanes layout.

    x_ref : (num_inputs, TB)        bf16  (batch on lanes)
    w*_ref: (out_pad, in_pad)       bf16  (PyTorch W^T, padded to sublane mult)
    b*_ref: (out_pad, 1)            f32
    o_ref : (num_classes_pad, TB)   f32
    """
    cdt = w1_ref.dtype  # MXU input dtype (bf16); accumulation stays f32

    # Layer 1: (H1p, NI) @ (NI, TB) -> (H1p, TB), + bias, ReLU
    h1 = jnp.dot(w1_ref[...], x_ref[...],
                 preferred_element_type=jnp.float32) + b1_ref[...]
    h1 = jnp.maximum(h1, 0.0)

    # Layer 2: (H2p, H1p) @ (H1p, TB) -> (H2p, TB), + bias, ReLU
    h2 = jnp.dot(w2_ref[...], h1.astype(cdt),
                 preferred_element_type=jnp.float32) + b2_ref[...]
    h2 = jnp.maximum(h2, 0.0)

    # Layer 3: logits (NCp, TB); padded class rows carry bias=-1e30 -> prob 0
    logits = jnp.dot(w3_ref[...], h2.astype(cdt),
                     preferred_element_type=jnp.float32) + b3_ref[...]

    # Dropout(p=0.3): eval-mode semantics -> identity (see TODO at top).

    # Softmax over the class axis (sublanes), numerically stabilized.
    m = jnp.max(logits, axis=0, keepdims=True)            # (1, TB)
    e = jnp.exp(logits - m)                                # EUP
    denom = jnp.sum(e, axis=0, keepdims=True)              # (1, TB)
    o_ref[...] = e * pl.reciprocal(denom, approx=True)     # EUP reciprocal


def our_module_forward(x, params, *, compute_dtype=jnp.bfloat16,
                       tile_batch=8192):
    """x: (B, num_inputs) f32. params: w{1,2,3} as (in,out), b{1,2,3} as (1,out).

    Returns softmax probabilities, shape (B, num_classes), f32.
    """
    w1, b1 = params["w1"], params["b1"]
    w2, b2 = params["w2"], params["b2"]
    w3, b3 = params["w3"], params["b3"]

    B, num_inputs = x.shape
    h1_dim, h2_dim, num_classes = w1.shape[1], w2.shape[1], w3.shape[1]
    # Pad the tiny feature dims once (on the resident weights) so every block
    # is sublane-aligned. Padded hidden units are exactly 0 through the ReLUs;
    # padded classes get bias -1e30 -> probability exactly 0.
    h1p = _round_up(h1_dim, 8)
    h2p = _round_up(h2_dim, 8)
    ncp = _round_up(num_classes, 8)

    # Batch tile on the lane axis: multiple of 128, big enough to amortize the
    # ~0.35us/step pipeline overhead; VMEM/tile stays ~1-5 MiB (see header).
    TB = min(_round_up(tile_batch, 128), _round_up(B, 128))
    Bp = _round_up(B, TB)
    grid = (Bp // TB,)

    # The one relayout pass over x: pad (<= one tile) + bf16 cast + transpose,
    # fused by XLA under jit. The kernel then streams 2 B/elem lane-dense tiles.
    x_t = jnp.pad(x, ((0, Bp - B), (0, 0))).astype(compute_dtype).T  # (NI, Bp)

    def pad_w(w, rows, cols):
        wt = w.T  # (out, in)
        return jnp.pad(wt, ((0, rows - wt.shape[0]),
                            (0, cols - wt.shape[1]))).astype(compute_dtype)

    def pad_b(b, rows, fill=0.0):
        v = b.reshape(-1).astype(jnp.float32)
        v = jnp.pad(v, (0, rows - v.shape[0]), constant_values=fill)
        return v.reshape(rows, 1)

    w1t, b1c = pad_w(w1, h1p, num_inputs), pad_b(b1, h1p)
    w2t, b2c = pad_w(w2, h2p, h1p),        pad_b(b2, h2p)
    w3t, b3c = pad_w(w3, ncp, h2p),        pad_b(b3, ncp, fill=-1e30)

    # Weights/biases: constant block index -> fetched once, VMEM-resident.
    resident = lambda a: pl.BlockSpec(a.shape, lambda i: (0, 0))

    itemsize = jnp.dtype(compute_dtype).itemsize
    cost = pl.CostEstimate(
        flops=2 * Bp * (num_inputs * h1_dim + h1_dim * h2_dim
                        + h2_dim * num_classes) + 6 * Bp * num_classes,
        transcendentals=Bp * num_classes + Bp,
        bytes_accessed=Bp * num_inputs * itemsize          # x tiles (bf16)
                       + Bp * ncp * 4                      # output tiles (f32)
                       + (w1t.size + w2t.size + w3t.size) * itemsize
                       + (b1c.size + b2c.size + b3c.size) * 4,
    )

    out_t = pl.pallas_call(
        mlp_softmax_kernel,
        out_shape=jax.ShapeDtypeStruct((ncp, Bp), jnp.float32),
        grid=grid,
        in_specs=[
            pl.BlockSpec((num_inputs, TB), lambda i: (0, i)),
            resident(w1t), resident(b1c),
            resident(w2t), resident(b2c),
            resident(w3t), resident(b3c),
        ],
        out_specs=pl.BlockSpec((ncp, TB), lambda i: (0, i)),
        compiler_params=pltpu.CompilerParams(
            dimension_semantics=("parallel",)),
        cost_estimate=cost,
    )(x_t, w1t, b1c, w2t, b2c, w3t, b3c)

    # Back to the module's (B, num_classes) layout (layout plumbing only).
    return out_t[:num_classes, :B].T


def init_params(key, num_inputs, num_classes):
    """Deterministic init mimicking PyTorch Linear default
    (uniform(-1/sqrt(fan_in), 1/sqrt(fan_in)))."""
    dims = [(num_inputs, 5), (5, 20), (20, num_classes)]
    params = {}
    for i, (fin, fout) in enumerate(dims, start=1):
        key, kw, kb = jax.random.split(key, 3)
        bound = 1.0 / (fin ** 0.5)
        params[f"w{i}"] = jax.random.uniform(
            kw, (fin, fout), jnp.float32, -bound, bound)
        params[f"b{i}"] = jax.random.uniform(
            kb, (1, fout), jnp.float32, -bound, bound)
    return params


def reference_forward_f32(x, params):
    """Pure-f32 reference (PyTorch forward semantics, eval-mode dropout)."""
    h1 = jnp.maximum(x @ params["w1"] + params["b1"], 0.0)
    h2 = jnp.maximum(h1 @ params["w2"] + params["b2"], 0.0)
    logits = h2 @ params["w3"] + params["b3"]
    return jax.nn.softmax(logits, axis=1)


def reference_forward_matched(x, params, compute_dtype=jnp.bfloat16):
    """Plain-XLA reference using the identical bf16-in / f32-accum recipe
    (exact softmax division; the kernel's approx reciprocal differs by ~1e-3)."""
    c = compute_dtype
    w1, w2, w3 = (params[k].astype(c) for k in ("w1", "w2", "w3"))
    b1, b2, b3 = (params[k].astype(jnp.float32) for k in ("b1", "b2", "b3"))
    h1 = jnp.maximum(
        jnp.dot(x.astype(c), w1, preferred_element_type=jnp.float32) + b1, 0.0)
    h2 = jnp.maximum(
        jnp.dot(h1.astype(c), w2, preferred_element_type=jnp.float32) + b2, 0.0)
    logits = jnp.dot(h2.astype(c), w3, preferred_element_type=jnp.float32) + b3
    return jax.nn.softmax(logits, axis=1)


if __name__ == "__main__":
    num_inputs, num_classes, batch = 32, 8, 8
    key = jax.random.PRNGKey(0)
    key, kx = jax.random.split(key)
    x = jax.random.normal(kx, (batch, num_inputs), jnp.float32)
    params = init_params(key, num_inputs, num_classes)

    forward = jax.jit(our_module_forward)
    out = jax.block_until_ready(forward(x, params))

    assert out.shape == (batch, num_classes)
    # each row is a valid probability distribution (approx reciprocal -> ~1e-3)
    assert jnp.allclose(jnp.sum(out, axis=1), jnp.ones((batch,)), atol=5e-3)
    # matches XLA with the identical bf16-input / f32-accumulate recipe
    ref_m = reference_forward_matched(x, params)
    assert jnp.allclose(out, ref_m, atol=5e-3, rtol=0.0)
    # close to the full-f32 (PyTorch-semantics) reference; slack covers bf16
    ref32 = reference_forward_f32(x, params)
    assert jnp.allclose(out, ref32, atol=3e-2, rtol=0.0)

    # Multi-step grid (3 tiles of 128 rows) at still-small shapes: exercises the
    # pipelined path, batch padding, and VMEM-resident weights.
    key, kx2 = jax.random.split(key)
    x2 = jax.random.normal(kx2, (384, num_inputs), jnp.float32)
    forward_tiled = jax.jit(functools.partial(our_module_forward,
                                              tile_batch=128))
    out2 = jax.block_until_ready(forward_tiled(x2, params))
    assert out2.shape == (384, num_classes)
    assert jnp.allclose(out2, reference_forward_matched(x2, params),
                        atol=5e-3, rtol=0.0)

    print("KERNEL_OK")
</pallas_src>

<mosaic_0001>
module attributes {stable_mosaic.version = 11 : i64} {
  func.func @mlp_softmax_kernel(%arg0: i32, %arg1: memref<32x128xbf16, #tpu.memory_space<vmem>>, %arg2: memref<8x32xbf16, #tpu.memory_space<vmem>>, %arg3: memref<8x1xf32, #tpu.memory_space<vmem>>, %arg4: memref<24x8xbf16, #tpu.memory_space<vmem>>, %arg5: memref<24x1xf32, #tpu.memory_space<vmem>>, %arg6: memref<8x24xbf16, #tpu.memory_space<vmem>>, %arg7: memref<8x1xf32, #tpu.memory_space<vmem>>, %arg8: memref<8x128xf32, #tpu.memory_space<vmem>>) attributes {dimension_semantics = [#tpu.dimension_semantics<parallel>], iteration_bounds = array<i64: 1>, scalar_prefetch = 0 : i64, scratch_operands = 0 : i64, tpu.core_type = #tpu.core_type<tc>, window_params = [{transform_indices = @transform_0, window_bounds = array<i64: 32, 128>}, {pipeline_mode = #tpu.pipeline_mode<synchronous>, transform_indices = @transform_1, window_bounds = array<i64: 8, 32>}, {pipeline_mode = #tpu.pipeline_mode<synchronous>, transform_indices = @transform_2, window_bounds = array<i64: 8, 1>}, {pipeline_mode = #tpu.pipeline_mode<synchronous>, transform_indices = @transform_3, window_bounds = array<i64: 24, 8>}, {pipeline_mode = #tpu.pipeline_mode<synchronous>, transform_indices = @transform_4, window_bounds = array<i64: 24, 1>}, {pipeline_mode = #tpu.pipeline_mode<synchronous>, transform_indices = @transform_5, window_bounds = array<i64: 8, 24>}, {pipeline_mode = #tpu.pipeline_mode<synchronous>, transform_indices = @transform_6, window_bounds = array<i64: 8, 1>}, {transform_indices = @transform_7, window_bounds = array<i64: 8, 128>}]} {
    %c0 = arith.constant 0 : index
    %c0_0 = arith.constant 0 : index
    %0 = vector.load %arg2[%c0, %c0_0] : memref<8x32xbf16, #tpu.memory_space<vmem>>, vector<8x32xbf16>
    %c0_1 = arith.constant 0 : index
    %c0_2 = arith.constant 0 : index
    %1 = vector.load %arg1[%c0_1, %c0_2] : memref<32x128xbf16, #tpu.memory_space<vmem>>, vector<32x128xbf16>
    %cst = arith.constant dense<0.000000e+00> : vector<8x128xf32>
    %2 = tpu.matmul %0, %1, %cst {dimension_numbers = #tpu.dot_dimension_numbers<[1], [0], [0], [1], [0, 0, 1, 1], [], []>} : vector<8x32xbf16>, vector<32x128xbf16>, vector<8x128xf32> -> vector<8x128xf32>
    %c0_3 = arith.constant 0 : index
    %c0_4 = arith.constant 0 : index
    %3 = vector.load %arg3[%c0_3, %c0_4] : memref<8x1xf32, #tpu.memory_space<vmem>>, vector<8x1xf32>
    %4 = vector.broadcast %3 : vector<8x1xf32> to vector<8x128xf32>
    %5 = arith.addf %2, %4 : vector<8x128xf32>
    %cst_5 = arith.constant 0.000000e+00 : f32
    %6 = vector.broadcast %cst_5 : f32 to vector<8x128xf32>
    %7 = arith.maximumf %5, %6 : vector<8x128xf32>
    %c0_6 = arith.constant 0 : index
    %c0_7 = arith.constant 0 : index
    %8 = vector.load %arg4[%c0_6, %c0_7] : memref<24x8xbf16, #tpu.memory_space<vmem>>, vector<24x8xbf16>
    %9 = arith.truncf %7 : vector<8x128xf32> to vector<8x128xbf16>
    %cst_8 = arith.constant dense<0.000000e+00> : vector<24x128xf32>
    %10 = tpu.matmul %8, %9, %cst_8 {dimension_numbers = #tpu.dot_dimension_numbers<[1], [0], [0], [1], [0, 0, 1, 1], [], []>} : vector<24x8xbf16>, vector<8x128xbf16>, vector<24x128xf32> -> vector<24x128xf32>
    %c0_9 = arith.constant 0 : index
    %c0_10 = arith.constant 0 : index
    %11 = vector.load %arg5[%c0_9, %c0_10] : memref<24x1xf32, #tpu.memory_space<vmem>>, vector<24x1xf32>
    %12 = vector.broadcast %11 : vector<24x1xf32> to vector<24x128xf32>
    %13 = arith.addf %10, %12 : vector<24x128xf32>
    %cst_11 = arith.constant 0.000000e+00 : f32
    %14 = vector.broadcast %cst_11 : f32 to vector<24x128xf32>
    %15 = arith.maximumf %13, %14 : vector<24x128xf32>
    %c0_12 = arith.constant 0 : index
    %c0_13 = arith.constant 0 : index
    %16 = vector.load %arg6[%c0_12, %c0_13] : memref<8x24xbf16, #tpu.memory_space<vmem>>, vector<8x24xbf16>
    %17 = arith.truncf %15 : vector<24x128xf32> to vector<24x128xbf16>
    %cst_14 = arith.constant dense<0.000000e+00> : vector<8x128xf32>
    %18 = tpu.matmul %16, %17, %cst_14 {dimension_numbers = #tpu.dot_dimension_numbers<[1], [0], [0], [1], [0, 0, 1, 1], [], []>} : vector<8x24xbf16>, vector<24x128xbf16>, vector<8x128xf32> -> vector<8x128xf32>
    %c0_15 = arith.constant 0 : index
    %c0_16 = arith.constant 0 : index
    %19 = vector.load %arg7[%c0_15, %c0_16] : memref<8x1xf32, #tpu.memory_space<vmem>>, vector<8x1xf32>
    %20 = vector.broadcast %19 : vector<8x1xf32> to vector<8x128xf32>
    %21 = arith.addf %18, %20 : vector<8x128xf32>
    %cst_17 = arith.constant dense<0xFF800000> : vector<128xf32>
    %22 = vector.multi_reduction <maximumf>, %21, %cst_17 [0] : vector<8x128xf32> to vector<128xf32>
    %23 = vector.shape_cast %22 : vector<128xf32> to vector<1x128xf32>
    %24 = vector.broadcast %23 : vector<1x128xf32> to vector<8x128xf32>
    %25 = arith.subf %21, %24 : vector<8x128xf32>
    %26 = math.exp %25 : vector<8x128xf32>
    %cst_18 = arith.constant dense<0.000000e+00> : vector<128xf32>
    %27 = vector.multi_reduction <add>, %26, %cst_18 [0] : vector<8x128xf32> to vector<128xf32>
    %28 = vector.shape_cast %27 : vector<128xf32> to vector<1x128xf32>
    %29 = tpu.reciprocal %28 {approx = true} : vector<1x128xf32> -> vector<1x128xf32>
    %30 = vector.broadcast %29 : vector<1x128xf32> to vector<8x128xf32>
    %31 = arith.mulf %26, %30 : vector<8x128xf32>
    %c0_19 = arith.constant 0 : index
    %c0_20 = arith.constant 0 : index
    %32 = vector.load %arg8[%c0_19, %c0_20] : memref<8x128xf32, #tpu.memory_space<vmem>>, vector<8x128xf32>
    tpu.vector_store %arg8[%c0_19, %c0_20], %31 {strides = array<i32>} : memref<8x128xf32, #tpu.memory_space<vmem>>, vector<8x128xf32>,
    return
  }
  func.func @transform_0(%arg0: i32) -> (i32, i32) {
    %c0_i32 = arith.constant 0 : i32
    %c0_i32_0 = arith.constant 0 : i32
    return %c0_i32, %arg0 : i32, i32
  }
  func.func @transform_1(%arg0: i32) -> (i32, i32) {
    %c0_i32 = arith.constant 0 : i32
    %c0_i32_0 = arith.constant 0 : i32
    %c0_i32_1 = arith.constant 0 : i32
    return %c0_i32, %c0_i32_0 : i32, i32
  }
  func.func @transform_2(%arg0: i32) -> (i32, i32) {
    %c0_i32 = arith.constant 0 : i32
    %c0_i32_0 = arith.constant 0 : i32
    %c0_i32_1 = arith.constant 0 : i32
    return %c0_i32, %c0_i32_0 : i32, i32
  }
  func.func @transform_3(%arg0: i32) -> (i32, i32) {
    %c0_i32 = arith.constant 0 : i32
    %c0_i32_0 = arith.constant 0 : i32
    %c0_i32_1 = arith.constant 0 : i32
    return %c0_i32, %c0_i32_0 : i32, i32
  }
  func.func @transform_4(%arg0: i32) -> (i32, i32) {
    %c0_i32 = arith.constant 0 : i32
    %c0_i32_0 = arith.constant 0 : i32
    %c0_i32_1 = arith.constant 0 : i32
    return %c0_i32, %c0_i32_0 : i32, i32
  }
  func.func @transform_5(%arg0: i32) -> (i32, i32) {
    %c0_i32 = arith.constant 0 : i32
    %c0_i32_0 = arith.constant 0 : i32
    %c0_i32_1 = arith.constant 0 : i32
    return %c0_i32, %c0_i32_0 : i32, i32
  }
  func.func @transform_6(%arg0: i32) -> (i32, i32) {
    %c0_i32 = arith.constant 0 : i32
    %c0_i32_0 = arith.constant 0 : i32
    %c0_i32_1 = arith.constant 0 : i32
    return %c0_i32, %c0_i32_0 : i32, i32
  }
  func.func @transform_7(%arg0: i32) -> (i32, i32) {
    %c0_i32 = arith.constant 0 : i32
    %c0_i32_0 = arith.constant 0 : i32
    return %c0_i32, %arg0 : i32, i32
  }
}

</mosaic_0001>

<bundles_post_ra>
// kernel: our_module_forward.1
= control target key start
LH: loop header
LB: loop body
LE: loop exit
PB: predicated region body
PF: predicated region fallthrough
CT: control target
= control target key end

     0   :  { %v318_v0 = vmov 0.0   ;;  %vm319_vm0 = vmmov 0   ;;  %v320_v2 = vmov 0   ;;  %vm50_vm1 = vcmask 261120   ;;  %s410_s0 = inlined_call_operand.vmem [shape: bf16[32,128], index: 0, kind: input, shape index: {}]   ;;  %s411_s2 = inlined_call_operand.vmem [shape: f32[8,1], index: 2, kind: input, shape index: {}]   ;;  %s412_s4 = inlined_call_operand.vmem [shape: f32[24,1], index: 4, kind: input, shape index: {}]   ;;  %s413_s1 = inlined_call_operand.vmem [shape: bf16[8,32], index: 1, kind: input, shape index: {}]   ;;  %s414_s6 = inlined_call_operand.vmem [shape: f32[8,1], index: 6, kind: input, shape index: {}]   ;;  %s415_s3 = inlined_call_operand.vmem [shape: bf16[24,8], index: 3, kind: input, shape index: {}]   ;;  %s416_s5 = inlined_call_operand.vmem [shape: bf16[8,24], index: 5, kind: input, shape index: {}]   ;;  %s417_s7 = inlined_call_operand.vmem [shape: f32[8,128], index: 7, kind: output, shape index: {}]  }
   0x1   :  { %282 = vmatprep.subr.bf16.mxu0 %v318_v0  ;;  %v310_v1 = vld [vmem:[%s410_s0] sm:$0xff]   ;;  %286 = vmatprep.mubr.msk.bf16.mxu0 %vm319_vm0, %v318_v0  ;;  %v311_v3 = vld [vmem:[%s410_s0 + $0x8] sm:$0xff]   ;;  %vm125_vm2 = vcmask 64512   ;;  %v101_v10 = vld [vmem:[%s412_s4 + $0x10] sm:$0xff]  ;;  %vm132_vm3 = vcmask 1043456   ;;  %vm196_vm4 = vcmask 195584  }
   0x2   :  { %308 = vset.pattern.permute.xlu0 %v320_v2  ;;  %309 = vset.pattern.permute.xlu1 %v320_v2  ;;  %v32_v4 = vld [vmem:[%s411_s2] sm:$0xff]  ;;  %v100_v9 = vld [vmem:[%s412_s4 + $0x8] sm:$0xff] }
   0x3   :  { %283 = vmatpush3.bf16.msra.mxu0 %v310_v1  ;;  %35 = vperm.xlu0 %308, %v32_v4   ;;  %v99_v5 = vld [vmem:[%s412_s4] sm:$0xff]  ;;  %v313_v20 = vld [vmem:[%s415_s3 + $0x8] ss:$0 sps:$4 sm:$0xff]  }
   0x4   :  { %284 = vmatprep.subr.bf16.mxu0 %v318_v0  ;;  %v27_v6 = vld [vmem:[%s413_s1] sm:$0xf]  ;;  %109 = vperm.xlu1 %309, %v100_v9  }
   0x5   :  { %v190_v7 = vld [vmem:[%s414_s6] sm:$0xff] }
   0x6   :  { %v312_v8 = vld [vmem:[%s415_s3] sm:$0xff]  }
   0x7   :  { %285 = vmatpush3.bf16.msra.mxu0 %v311_v3  ;;  %104 = vperm.xlu0 %308, %v99_v5   ;;  %v187_v37 = vld [vmem:[%s416_s5] sm:$0xf] }
   0x8   :  { %292 = vmatprep.mubr.msk.bf16.mxu1 %vm125_vm2, %v312_v8  ;;  %114 = vperm.xlu1 %309, %v101_v10  }
   0xa   :  { %287 = vmatmul.mubr.msk.bf16.vlgmr.msra.gmra.mrb[0].mxu0 %vm50_vm1, %v27_v6 }
   0xb   :  { %193 = vperm.xlu0 %308, %v190_v7  }
  0x82   :  { %v36_v11 = vpop.permute.xlu0 %35 }
  0x83   :  { %v110_v21 = vpop.permute.xlu1 %109 }
  0x86   :  { %v105_v24 = vpop.permute.xlu0 %104 }
  0x87   :  { %v115_v22 = vpop.permute.xlu1 %114 }
  0x8a   :  { %v194_v38 = vpop.permute.xlu0 %193 }
  0xdd   :  { %v88_v12 = vpop.f32.mrb[0].mxu0 }
  0xde   :  { %v89_v13 = vadd.f32 %v88_v12, %v36_v11  ;;  %v288_v14 = vpop.f32.mrb[1].mxu0 }
  0xdf   :  { %v91_v15 = vpop.f32.mrb[2].mxu0 }
  0xe0   :  { %v94_v16 = vmax.f32 %v89_v13, 0.0  ;;  %v289_v17 = vpop.f32.mrb[3].mxu0 }
  0xe2   :  { %v98_v18 = vpack.c.bf16 %v94_v16, %v94_v16 }
  0xe4   :  { %304 = vmatprep.subr.msk.bf16.mxu1 %vm132_vm3, %v98_v18  ;;  %v134_v19 = vsel %vm132_vm3, %v98_v18, 0 }
  0xe5   :  { %291 = vmatpush3.bf16.msra.mxu1 %v134_v19 }
  0xe6   :  { %296 = vmatprep.subr.bf16.mxu1 %v318_v0 }
  0xe8   :  { %293 = vmatmul.mubr.msk.bf16.vlgmr.msra.gmra.mrb[0].mxu1 %vm125_vm2, %v313_v20 }
  0xe9   :  { %300 = vmatprep.mubr.msk.bf16.mxu1 %vm319_vm0, %v318_v0 }
 0x1bb   :  { %v294_v23 = vpop.f32.mrb[0].mxu1 }
 0x1bc   :  { %v179_v25 = vadd.f32 %v294_v23, %v115_v22  ;;  %v170_v26 = vpop.f32.mrb[1].mxu1 }
 0x1bd   :  { %v171_v27 = vadd.f32 %v170_v26, %v105_v24  ;;  %v295_v28 = vpop.f32.mrb[2].mxu1 }
 0x1be   :  { %v173_v29 = vpop.f32.mrb[3].mxu1  ;;  %v186_v31 = vmax.f32 %v179_v25, 0.0 }
 0x1bf   :  { %v174_v30 = vadd.f32 %v173_v29, %v110_v21  ;;  %v184_v32 = vmax.f32 %v171_v27, 0.0 }
 0x1c0   :  { %v189_v35 = vpack.c.bf16 %v186_v31, %v186_v31 }
 0x1c1   :  { %v185_v33 = vmax.f32 %v174_v30, 0.0 }
 0x1c2   :  { %v201_v36 = vsel %vm132_vm3, %v189_v35, 0 }
 0x1c3   :  { %v188_v34 = vpack.c.bf16 %v185_v33, %v184_v32 }
 0x1c5   :  { %297 = vmatpush3.bf16.msra.mxu1 %v188_v34 }
 0x1c6   :  { %298 = vmatprep.subr.bf16.mxu1 %v318_v0 }
 0x1c9   :  { %299 = vmatpush3.bf16.msra.mxu1 %v201_v36 }
 0x1cc   :  { %301 = vmatmul.mubr.msk.bf16.vlgmr.msra.gmra.mrb[4].mxu1 %vm196_vm4, %v187_v37 }
 0x29f   :  { %v237_v39 = vpop.f32.mrb[4].mxu1 }
 0x2a0   :  { %v238_v40 = vadd.f32 %v237_v39, %v194_v38  ;;  %v302_v41 = vpop.f32.mrb[5].mxu1 }
 0x2a1   :  { %v240_v42 = vpop.f32.mrb[6].mxu1 }
 0x2a2   :  { %v243_v43 = vrot.slane %v238_v40, 4  ;;  %v303_v44 = vpop.f32.mrb[7].mxu1 }
 0x2a4   :  { %v244_v45 = vmax.f32 %v238_v40, %v243_v43 }
 0x2a6   :  { %v245_v46 = vrot.slane %v244_v45, 2 }
 0x2a8   :  { %v246_v47 = vmax.f32 %v244_v45, %v245_v46 }
 0x2aa   :  { %v247_v48 = vrot.slane %v246_v47, 1 }
 0x2ac   :  { %v248_v49 = vmax.f32 %v246_v47, %v247_v48 }
 0x2ae   :  { %v249_v50 = vsub.f32 %v238_v40, %v248_v49 }
 0x2b0   :  { %v250_v51 = vmul.f32 1.442695, %v249_v50 }
 0x2b2   :  { %314 = vpow2.f32 %v250_v51 }
 0x2bc   :  { %v315_v52 = vpop.eup %314 }
 0x2bd   :  { %v252_v53 = vrot.slane %v315_v52, 4 }
 0x2bf   :  { %v253_v54 = vadd.f32 %v315_v52, %v252_v53 }
 0x2c1   :  { %v254_v55 = vrot.slane %v253_v54, 2 }
 0x2c3   :  { %v255_v56 = vadd.f32 %v254_v55, %v253_v54 }
 0x2c5   :  { %v256_v57 = vrot.slane %v255_v56, 1 }
 0x2c7   :  { %v257_v58 = vadd.f32 %v256_v57, %v255_v56 }
 0x2c9   :  { %316 = vrcp.f32 %v257_v58 }
 0x2d3   :  { %v317_v59 = vpop.eup %316 }
 0x2d4   :  { %v259_v60 = vmul.f32 %v317_v59, %v315_v52 }
 0x2d6   :  { %260 = vst [vmem:[%s417_s7] sm:$0xff] %v259_v60 }

</bundles_post_ra>
